<compile_context>
chip_gen: v7x
topology: tpu7x:2x2x1
jax: 0.10.0
libtpu: 0.0.40
codegen_flags: <defaults>
</compile_context>

<pallas_src>
import functools

import jax
import jax.numpy as jnp
from jax import lax
from jax.experimental import pallas as pl
from jax.experimental.pallas import tpu as pltpu


def _round_up(x, m):
    return ((x + m - 1) // m) * m


# --------------------------------------------------------------------------
# Main (single-pass) kernel: one (TB, C, HW) slab in, one out.
# --------------------------------------------------------------------------
def _channel_attention_kernel(x_ref, w1, b1, w2, b2, w3, b3, w4, b4, o_ref,
                              *, inv_hw):
    # Global average / max pool over the spatial axis (f32 accumulation).
    avg = jnp.sum(x_ref[...], axis=-1, dtype=jnp.float32) * inv_hw    # (TB, C)
    mxp = jnp.max(x_ref[...], axis=-1).astype(jnp.float32)            # (TB, C)

    # avg path: relu(fc1) -> fc2   (weights pre-transposed: (C,h), (h,C))
    h1 = jnp.maximum(
        jnp.dot(avg, w1[...], preferred_element_type=jnp.float32) + b1[...], 0.0)
    a_out = jnp.dot(h1, w2[...], preferred_element_type=jnp.float32) + b2[...]

    # max path: relu(fc3) -> fc4
    h3 = jnp.maximum(
        jnp.dot(mxp, w3[...], preferred_element_type=jnp.float32) + b3[...], 0.0)
    m_out = jnp.dot(h3, w4[...], preferred_element_type=jnp.float32) + b4[...]

    scale = jax.nn.sigmoid(a_out + m_out)                              # (TB, C) f32
    o_ref[...] = x_ref[...] * scale.astype(o_ref.dtype)[:, :, None]


# --------------------------------------------------------------------------
# Chunked fallback kernels (only when one (C, HW) row is too big for VMEM).
# --------------------------------------------------------------------------
def _pool_kernel(x_ref, sum_ref, max_ref, *, hw, thw, masked):
    k = pl.program_id(1)

    @pl.when(k == 0)
    def _init():
        sum_ref[...] = jnp.zeros_like(sum_ref)
        max_ref[...] = jnp.full_like(max_ref, -jnp.inf)

    xv = x_ref[...]                                        # (1, C, thw)
    if masked:
        # Mask columns past the true HW (boundary-block padding is garbage).
        col = k * thw + lax.broadcasted_iota(jnp.int32, (1, 1, thw), 2)
        valid = col < hw
        x_sum = jnp.where(valid, xv, jnp.zeros((), xv.dtype))
        x_max = jnp.where(valid, xv, jnp.asarray(jnp.finfo(xv.dtype).min, xv.dtype))
    else:
        x_sum = xv
        x_max = xv

    sum_ref[...] += jnp.sum(x_sum, axis=-1, keepdims=True, dtype=jnp.float32)
    max_ref[...] = jnp.maximum(
        max_ref[...],
        jnp.max(x_max, axis=-1, keepdims=True).astype(jnp.float32))


def _scale_kernel(x_ref, s_ref, o_ref):
    # x: (1, C, thw), s: (1, C, 1) already in x's dtype.
    o_ref[...] = x_ref[...] * s_ref[...]


def _channel_attention_chunked(xf, w1t, b1, w2t, b2, w3t, b3, w4t, b4,
                               max_block_bytes):
    B, C, HW = xf.shape
    dtype = xf.dtype
    itemsize = jnp.dtype(dtype).itemsize
    cpad = _round_up(C, 8)

    chunk_target = max(min(2 << 20, int(max_block_bytes)), 128 * cpad * itemsize)
    thw = max(128, (chunk_target // (cpad * itemsize)) // 128 * 128)
    if thw >= HW:
        thw = HW                                  # full-dim block is always legal
    n_chunks = -(-HW // thw)
    masked = (HW % thw) != 0

    chunk_vmem = cpad * _round_up(thw, 128) * itemsize
    vmem_limit = int(min(max(6 * chunk_vmem + (4 << 20), 16 << 20), 40 << 20))

    sums, maxs = pl.pallas_call(
        functools.partial(_pool_kernel, hw=HW, thw=thw, masked=masked),
        out_shape=(jax.ShapeDtypeStruct((B, C, 1), jnp.float32),
                   jax.ShapeDtypeStruct((B, C, 1), jnp.float32)),
        grid_spec=pltpu.PrefetchScalarGridSpec(
            num_scalar_prefetch=0,
            grid=(B, n_chunks),
            in_specs=[pl.BlockSpec((1, C, thw), lambda b, k: (b, 0, k))],
            out_specs=[pl.BlockSpec((1, C, 1), lambda b, k: (b, 0, 0)),
                       pl.BlockSpec((1, C, 1), lambda b, k: (b, 0, 0))],
        ),
        compiler_params=pltpu.CompilerParams(
            dimension_semantics=("parallel", "arbitrary"),
            vmem_limit_bytes=vmem_limit),
    )(xf)

    # Tiny (B, C) MLPs in plain JAX — negligible next to the slab traffic.
    avg = sums[:, :, 0] * (1.0 / float(HW))
    mxp = maxs[:, :, 0]
    a_out = jnp.maximum(avg @ w1t + b1, 0.0) @ w2t + b2
    m_out = jnp.maximum(mxp @ w3t + b3, 0.0) @ w4t + b4
    scale = jax.nn.sigmoid(a_out + m_out).astype(dtype)[:, :, None]   # (B, C, 1)

    out = pl.pallas_call(
        _scale_kernel,
        out_shape=jax.ShapeDtypeStruct((B, C, HW), dtype),
        grid_spec=pltpu.PrefetchScalarGridSpec(
            num_scalar_prefetch=0,
            grid=(B, n_chunks),
            in_specs=[pl.BlockSpec((1, C, thw), lambda b, k: (b, 0, k)),
                      pl.BlockSpec((1, C, 1), lambda b, k: (b, 0, 0))],
            out_specs=pl.BlockSpec((1, C, thw), lambda b, k: (b, 0, k)),
        ),
        compiler_params=pltpu.CompilerParams(
            dimension_semantics=("parallel", "arbitrary"),
            vmem_limit_bytes=vmem_limit),
    )(xf, scale)
    return out


# --------------------------------------------------------------------------
# Tiling policy & wrapper.
# --------------------------------------------------------------------------
def _choose_batch_tile(B, per_row_bytes, *, target_bytes=2 << 20, min_steps=8):
    """Pick TB (a divisor of B): blocks <= ~target_bytes, preferring an even
    number of grid steps (balanced v7x megacore split) and >= min_steps steps
    when B allows (pipeline steady state); otherwise maximize the step count."""
    divisors = [d for d in range(1, B + 1) if B % d == 0]
    fitting = [d for d in divisors if d * per_row_bytes <= target_bytes] or [1]

    def pick(cands):
        big = [d for d in cands if B // d >= min_steps]
        # Enough steps possible: largest block that still gives >= min_steps.
        # Otherwise: smallest block (maximize step count).
        return max(big) if big else min(cands)

    even = [d for d in fitting if (B // d) % 2 == 0]
    return pick(even) if even else pick(fitting)


def channel_attention_pallas(x, params, *, max_block_bytes=5 << 20):
    """x: (B, C, H, W) NCHW.  params: PyTorch-layout fc1..fc4
    (w*: (out_features, in_features), b*: (out_features,))."""
    B, C, H, W = x.shape
    HW = H * W
    itemsize = jnp.dtype(x.dtype).itemsize

    xf = x.reshape(B, C, HW)             # metadata-only reshape, no HBM copy

    # Pre-transpose the tiny MLP so in-kernel matmul outputs are lane-dense.
    w1t, w2t = params["w1"].T, params["w2"].T          # (C, h), (h, C)
    w3t, w4t = params["w3"].T, params["w4"].T
    b1 = params["b1"].reshape(1, -1)
    b2 = params["b2"].reshape(1, -1)
    b3 = params["b3"].reshape(1, -1)
    b4 = params["b4"].reshape(1, -1)

    # VMEM footprint of one (C, HW) row (sublane/lane padding included).
    row_vmem = _round_up(C, 8) * _round_up(HW, 128) * itemsize

    if row_vmem > max_block_bytes:
        out = _channel_attention_chunked(xf, w1t, b1, w2t, b2, w3t, b3, w4t, b4,
                                         max_block_bytes)
        return out.reshape(B, C, H, W)

    TB = _choose_batch_tile(B, row_vmem,
                            target_bytes=min(2 << 20, int(max_block_bytes)))
    grid = (B // TB,)

    block_vmem = TB * row_vmem
    weight_bytes = sum(int(a.size) * jnp.dtype(a.dtype).itemsize
                       for a in (w1t, b1, w2t, b2, w3t, b3, w4t, b4))
    # 2x in + 2x out pipeline buffers + ~2 block-sized temps + weights + headroom.
    vmem_limit = int(min(max(6 * block_vmem + 2 * weight_bytes + (4 << 20),
                             16 << 20), 40 << 20))

    def resident(a):
        zeros = (0,) * a.ndim
        return pl.BlockSpec(a.shape, lambda b, _z=zeros: _z)

    kernel = functools.partial(_channel_attention_kernel, inv_hw=1.0 / float(HW))

    out = pl.pallas_call(
        kernel,
        out_shape=jax.ShapeDtypeStruct((B, C, HW), x.dtype),
        grid_spec=pltpu.PrefetchScalarGridSpec(
            num_scalar_prefetch=0,
            grid=grid,
            in_specs=[
                # Last two block dims == full array dims -> no 128-padding needed.
                pl.BlockSpec((TB, C, HW), lambda b: (b, 0, 0)),
                resident(w1t), resident(b1),
                resident(w2t), resident(b2),
                resident(w3t), resident(b3),
                resident(w4t), resident(b4),
            ],
            out_specs=pl.BlockSpec((TB, C, HW), lambda b: (b, 0, 0)),
        ),
        compiler_params=pltpu.CompilerParams(
            dimension_semantics=("parallel",),
            vmem_limit_bytes=vmem_limit),
    )(xf, w1t, b1, w2t, b2, w3t, b3, w4t, b4)

    return out.reshape(B, C, H, W)


# --------------------------------------------------------------------------
# Params / reference (mirror the PyTorch module).
# --------------------------------------------------------------------------
def init_params(key, channel, ratio=2):
    """kaiming_normal_(fan_in, relu) => std = sqrt(2 / fan_in); biases zero."""
    hidden = int(channel / ratio)
    k1, k2, k3, k4 = jax.random.split(key, 4)

    def kaiming(k, out_f, in_f):
        std = (2.0 / in_f) ** 0.5
        return jax.random.normal(k, (out_f, in_f), jnp.float32) * std

    return {
        "w1": kaiming(k1, hidden, channel), "b1": jnp.zeros((hidden,), jnp.float32),
        "w2": kaiming(k2, channel, hidden), "b2": jnp.zeros((channel,), jnp.float32),
        "w3": kaiming(k3, hidden, channel), "b3": jnp.zeros((hidden,), jnp.float32),
        "w4": kaiming(k4, channel, hidden), "b4": jnp.zeros((channel,), jnp.float32),
    }


def channel_attention_ref(x, p):
    avg = jnp.mean(x, axis=(2, 3))                       # (B, C)
    mxp = jnp.max(x, axis=(2, 3))                        # (B, C)
    a = jnp.maximum(avg @ p["w1"].T + p["b1"], 0.0) @ p["w2"].T + p["b2"]
    m = jnp.maximum(mxp @ p["w3"].T + p["b3"], 0.0) @ p["w4"].T + p["b4"]
    scale = jax.nn.sigmoid(a + m)                        # (B, C)
    return x * scale[:, :, None, None]


if __name__ == "__main__":
    key = jax.random.PRNGKey(0)
    kx1, kx2, kp = jax.random.split(key, 3)

    B, C = 2, 4
    params = init_params(kp, C, ratio=2)

    x1 = jax.random.normal(kx1, (B, C, 16, 16), jnp.float32)   # HW = 256
    x2 = jax.random.normal(kx2, (B, C, 12, 12), jnp.float32)   # HW = 144 (not %128)

    r1 = channel_attention_ref(x1, params)
    r2 = channel_attention_ref(x2, params)

    # Main path, lane-aligned HW.
    o1 = jax.block_until_ready(channel_attention_pallas(x1, params))
    assert o1.shape == x1.shape
    assert jnp.allclose(o1, r1, atol=1e-5, rtol=1e-5), "mismatch (main, HW=256)"

    # Main path, HW not a multiple of 128 (no wrapper pad/crop).
    o2 = jax.block_until_ready(channel_attention_pallas(x2, params))
    assert jnp.allclose(o2, r2, atol=1e-5, rtol=1e-5), "mismatch (main, HW=144)"

    # Force the HW-chunked fallback path (tiny per-block budget).
    o3 = jax.block_until_ready(
        channel_attention_pallas(x1, params, max_block_bytes=1024))
    assert jnp.allclose(o3, r1, atol=1e-5, rtol=1e-5), "mismatch (chunked, even)"

    o4 = jax.block_until_ready(
        channel_attention_pallas(x2, params, max_block_bytes=1024))
    assert jnp.allclose(o4, r2, atol=1e-5, rtol=1e-5), "mismatch (chunked, masked)"

    print("KERNEL_OK")
</pallas_src>

<mosaic_0001>
module attributes {stable_mosaic.version = 11 : i64} {
  func.func @_channel_attention_kernel(%arg0: i32, %arg1: memref<1x4x256xf32, #tpu.memory_space<vmem>>, %arg2: memref<4x2xf32, #tpu.memory_space<vmem>>, %arg3: memref<1x2xf32, #tpu.memory_space<vmem>>, %arg4: memref<2x4xf32, #tpu.memory_space<vmem>>, %arg5: memref<1x4xf32, #tpu.memory_space<vmem>>, %arg6: memref<4x2xf32, #tpu.memory_space<vmem>>, %arg7: memref<1x2xf32, #tpu.memory_space<vmem>>, %arg8: memref<2x4xf32, #tpu.memory_space<vmem>>, %arg9: memref<1x4xf32, #tpu.memory_space<vmem>>, %arg10: memref<1x4x256xf32, #tpu.memory_space<vmem>>) attributes {dimension_semantics = [#tpu.dimension_semantics<parallel>], iteration_bounds = array<i64: 2>, scalar_prefetch = 0 : i64, scratch_operands = 0 : i64, tpu.core_type = #tpu.core_type<tc>, window_params = [{transform_indices = @transform_0, window_bounds = array<i64: 1, 4, 256>}, {pipeline_mode = #tpu.pipeline_mode<synchronous>, transform_indices = @transform_1, window_bounds = array<i64: 4, 2>}, {pipeline_mode = #tpu.pipeline_mode<synchronous>, transform_indices = @transform_2, window_bounds = array<i64: 1, 2>}, {pipeline_mode = #tpu.pipeline_mode<synchronous>, transform_indices = @transform_3, window_bounds = array<i64: 2, 4>}, {pipeline_mode = #tpu.pipeline_mode<synchronous>, transform_indices = @transform_4, window_bounds = array<i64: 1, 4>}, {pipeline_mode = #tpu.pipeline_mode<synchronous>, transform_indices = @transform_5, window_bounds = array<i64: 4, 2>}, {pipeline_mode = #tpu.pipeline_mode<synchronous>, transform_indices = @transform_6, window_bounds = array<i64: 1, 2>}, {pipeline_mode = #tpu.pipeline_mode<synchronous>, transform_indices = @transform_7, window_bounds = array<i64: 2, 4>}, {pipeline_mode = #tpu.pipeline_mode<synchronous>, transform_indices = @transform_8, window_bounds = array<i64: 1, 4>}, {transform_indices = @transform_9, window_bounds = array<i64: 1, 4, 256>}]} {
    %c0 = arith.constant 0 : index
    %c0_0 = arith.constant 0 : index
    %c0_1 = arith.constant 0 : index
    %0 = vector.load %arg1[%c0, %c0_0, %c0_1] : memref<1x4x256xf32, #tpu.memory_space<vmem>>, vector<1x4x256xf32>
    %cst = arith.constant dense<0.000000e+00> : vector<1x4xf32>
    %1 = vector.multi_reduction <add>, %0, %cst [2] : vector<1x4x256xf32> to vector<1x4xf32>
    %cst_2 = arith.constant 3.906250e-03 : f32
    %2 = vector.broadcast %cst_2 : f32 to vector<1x4xf32>
    %3 = arith.mulf %1, %2 : vector<1x4xf32>
    %c0_3 = arith.constant 0 : index
    %c0_4 = arith.constant 0 : index
    %c0_5 = arith.constant 0 : index
    %4 = vector.load %arg1[%c0_3, %c0_4, %c0_5] : memref<1x4x256xf32, #tpu.memory_space<vmem>>, vector<1x4x256xf32>
    %cst_6 = arith.constant dense<0xFF800000> : vector<1x4xf32>
    %5 = vector.multi_reduction <maximumf>, %4, %cst_6 [2] : vector<1x4x256xf32> to vector<1x4xf32>
    %c0_7 = arith.constant 0 : index
    %c0_8 = arith.constant 0 : index
    %6 = vector.load %arg2[%c0_7, %c0_8] : memref<4x2xf32, #tpu.memory_space<vmem>>, vector<4x2xf32>
    %cst_9 = arith.constant dense<0.000000e+00> : vector<1x2xf32>
    %7 = tpu.matmul %3, %6, %cst_9 {dimension_numbers = #tpu.dot_dimension_numbers<[1], [0], [0], [1], [0, 0, 1, 1], [], []>} : vector<1x4xf32>, vector<4x2xf32>, vector<1x2xf32> -> vector<1x2xf32>
    %c0_10 = arith.constant 0 : index
    %c0_11 = arith.constant 0 : index
    %8 = vector.load %arg3[%c0_10, %c0_11] : memref<1x2xf32, #tpu.memory_space<vmem>>, vector<1x2xf32>
    %9 = arith.addf %7, %8 : vector<1x2xf32>
    %cst_12 = arith.constant 0.000000e+00 : f32
    %10 = vector.broadcast %cst_12 : f32 to vector<1x2xf32>
    %11 = arith.maximumf %9, %10 : vector<1x2xf32>
    %c0_13 = arith.constant 0 : index
    %c0_14 = arith.constant 0 : index
    %12 = vector.load %arg4[%c0_13, %c0_14] : memref<2x4xf32, #tpu.memory_space<vmem>>, vector<2x4xf32>
    %cst_15 = arith.constant dense<0.000000e+00> : vector<1x4xf32>
    %13 = tpu.matmul %11, %12, %cst_15 {dimension_numbers = #tpu.dot_dimension_numbers<[1], [0], [0], [1], [0, 0, 1, 1], [], []>} : vector<1x2xf32>, vector<2x4xf32>, vector<1x4xf32> -> vector<1x4xf32>
    %c0_16 = arith.constant 0 : index
    %c0_17 = arith.constant 0 : index
    %14 = vector.load %arg5[%c0_16, %c0_17] : memref<1x4xf32, #tpu.memory_space<vmem>>, vector<1x4xf32>
    %15 = arith.addf %13, %14 : vector<1x4xf32>
    %c0_18 = arith.constant 0 : index
    %c0_19 = arith.constant 0 : index
    %16 = vector.load %arg6[%c0_18, %c0_19] : memref<4x2xf32, #tpu.memory_space<vmem>>, vector<4x2xf32>
    %cst_20 = arith.constant dense<0.000000e+00> : vector<1x2xf32>
    %17 = tpu.matmul %5, %16, %cst_20 {dimension_numbers = #tpu.dot_dimension_numbers<[1], [0], [0], [1], [0, 0, 1, 1], [], []>} : vector<1x4xf32>, vector<4x2xf32>, vector<1x2xf32> -> vector<1x2xf32>
    %c0_21 = arith.constant 0 : index
    %c0_22 = arith.constant 0 : index
    %18 = vector.load %arg7[%c0_21, %c0_22] : memref<1x2xf32, #tpu.memory_space<vmem>>, vector<1x2xf32>
    %19 = arith.addf %17, %18 : vector<1x2xf32>
    %cst_23 = arith.constant 0.000000e+00 : f32
    %20 = vector.broadcast %cst_23 : f32 to vector<1x2xf32>
    %21 = arith.maximumf %19, %20 : vector<1x2xf32>
    %c0_24 = arith.constant 0 : index
    %c0_25 = arith.constant 0 : index
    %22 = vector.load %arg8[%c0_24, %c0_25] : memref<2x4xf32, #tpu.memory_space<vmem>>, vector<2x4xf32>
    %cst_26 = arith.constant dense<0.000000e+00> : vector<1x4xf32>
    %23 = tpu.matmul %21, %22, %cst_26 {dimension_numbers = #tpu.dot_dimension_numbers<[1], [0], [0], [1], [0, 0, 1, 1], [], []>} : vector<1x2xf32>, vector<2x4xf32>, vector<1x4xf32> -> vector<1x4xf32>
    %c0_27 = arith.constant 0 : index
    %c0_28 = arith.constant 0 : index
    %24 = vector.load %arg9[%c0_27, %c0_28] : memref<1x4xf32, #tpu.memory_space<vmem>>, vector<1x4xf32>
    %25 = arith.addf %23, %24 : vector<1x4xf32>
    %26 = arith.addf %15, %25 : vector<1x4xf32>
    %27 = arith.negf %26 : vector<1x4xf32>
    %28 = math.exp %27 : vector<1x4xf32>
    %cst_29 = arith.constant 1.000000e+00 : f32
    %29 = vector.broadcast %cst_29 : f32 to vector<1x4xf32>
    %30 = arith.addf %29, %28 : vector<1x4xf32>
    %31 = arith.divf %29, %30 : vector<1x4xf32>
    %c0_30 = arith.constant 0 : index
    %c0_31 = arith.constant 0 : index
    %c0_32 = arith.constant 0 : index
    %32 = vector.load %arg1[%c0_30, %c0_31, %c0_32] : memref<1x4x256xf32, #tpu.memory_space<vmem>>, vector<1x4x256xf32>
    %33 = vector.shape_cast %31 : vector<1x4xf32> to vector<1x4x1xf32>
    %34 = vector.broadcast %33 : vector<1x4x1xf32> to vector<1x4x256xf32>
    %35 = arith.mulf %32, %34 : vector<1x4x256xf32>
    %c0_33 = arith.constant 0 : index
    %c0_34 = arith.constant 0 : index
    %c0_35 = arith.constant 0 : index
    %36 = vector.load %arg10[%c0_33, %c0_34, %c0_35] : memref<1x4x256xf32, #tpu.memory_space<vmem>>, vector<1x4x256xf32>
    tpu.vector_store %arg10[%c0_33, %c0_34, %c0_35], %35 {strides = array<i32>} : memref<1x4x256xf32, #tpu.memory_space<vmem>>, vector<1x4x256xf32>,
    return
  }
  func.func @transform_0(%arg0: i32) -> (i32, i32, i32) {
    %c0_i32 = arith.constant 0 : i32
    %c0_i32_0 = arith.constant 0 : i32
    %c0_i32_1 = arith.constant 0 : i32
    return %arg0, %c0_i32, %c0_i32_0 : i32, i32, i32
  }
  func.func @transform_1(%arg0: i32) -> (i32, i32) {
    %c0_i32 = arith.constant 0 : i32
    %c0_i32_0 = arith.constant 0 : i32
    %c0_i32_1 = arith.constant 0 : i32
    return %c0_i32, %c0_i32_0 : i32, i32
  }
  func.func @transform_2(%arg0: i32) -> (i32, i32) {
    %c0_i32 = arith.constant 0 : i32
    %c0_i32_0 = arith.constant 0 : i32
    %c0_i32_1 = arith.constant 0 : i32
    return %c0_i32, %c0_i32_0 : i32, i32
  }
  func.func @transform_3(%arg0: i32) -> (i32, i32) {
    %c0_i32 = arith.constant 0 : i32
    %c0_i32_0 = arith.constant 0 : i32
    %c0_i32_1 = arith.constant 0 : i32
    return %c0_i32, %c0_i32_0 : i32, i32
  }
  func.func @transform_4(%arg0: i32) -> (i32, i32) {
    %c0_i32 = arith.constant 0 : i32
    %c0_i32_0 = arith.constant 0 : i32
    %c0_i32_1 = arith.constant 0 : i32
    return %c0_i32, %c0_i32_0 : i32, i32
  }
  func.func @transform_5(%arg0: i32) -> (i32, i32) {
    %c0_i32 = arith.constant 0 : i32
    %c0_i32_0 = arith.constant 0 : i32
    %c0_i32_1 = arith.constant 0 : i32
    return %c0_i32, %c0_i32_0 : i32, i32
  }
  func.func @transform_6(%arg0: i32) -> (i32, i32) {
    %c0_i32 = arith.constant 0 : i32
    %c0_i32_0 = arith.constant 0 : i32
    %c0_i32_1 = arith.constant 0 : i32
    return %c0_i32, %c0_i32_0 : i32, i32
  }
  func.func @transform_7(%arg0: i32) -> (i32, i32) {
    %c0_i32 = arith.constant 0 : i32
    %c0_i32_0 = arith.constant 0 : i32
    %c0_i32_1 = arith.constant 0 : i32
    return %c0_i32, %c0_i32_0 : i32, i32
  }
  func.func @transform_8(%arg0: i32) -> (i32, i32) {
    %c0_i32 = arith.constant 0 : i32
    %c0_i32_0 = arith.constant 0 : i32
    %c0_i32_1 = arith.constant 0 : i32
    return %c0_i32, %c0_i32_0 : i32, i32
  }
  func.func @transform_9(%arg0: i32) -> (i32, i32, i32) {
    %c0_i32 = arith.constant 0 : i32
    %c0_i32_0 = arith.constant 0 : i32
    %c0_i32_1 = arith.constant 0 : i32
    return %arg0, %c0_i32, %c0_i32_0 : i32, i32, i32
  }
}

</mosaic_0001>

<bundles_post_ra>
// kernel: tpu_custom_call.1
= control target key start
LH: loop header
LB: loop body
LE: loop exit
PB: predicated region body
PF: predicated region fallthrough
CT: control target
= control target key end

     0   :  { %14 = vsyncpa [#allocation3], 0  ;;  %s1272_s0 = inlined_call_operand.hbm [shape: f32[2,4,256], index: 0, kind: input, shape index: {}]   ;;  %s1273_s1 = inlined_call_operand.vmem [shape: f32[4,2], index: 1, kind: input, shape index: {}]   ;;  %s1274_s2 = inlined_call_operand.vmem [shape: f32[1,2], index: 2, kind: input, shape index: {}]   ;;  %s1275_s3 = inlined_call_operand.vmem [shape: f32[2,4], index: 3, kind: input, shape index: {}]   ;;  %s1276_s4 = inlined_call_operand.vmem [shape: f32[1,4], index: 4, kind: input, shape index: {}]   ;;  %s1277_s5 = inlined_call_operand.vmem [shape: f32[4,2], index: 5, kind: input, shape index: {}]   ;;  %s1278_s6 = inlined_call_operand.vmem [shape: f32[1,2], index: 6, kind: input, shape index: {}]   ;;  %s1279_s7 = inlined_call_operand.vmem [shape: f32[2,4], index: 7, kind: input, shape index: {}]   ;;  %s1280_s8 = inlined_call_operand.vmem [shape: f32[1,4], index: 8, kind: input, shape index: {}]   ;;  %s1281_s9 = inlined_call_operand.hbm [shape: f32[2,4,256], index: 9, kind: output, shape index: {}]  }
   0x1   :  { %16 = vsyncpa [#allocation3 + $0x1], 0 }
   0x2   :  { %17 = vsyncpa [#allocation4], 0 }
   0x3   :  { %19 = vsyncpa [#allocation4 + $0x1], 0  ;;  %s1066_s30 = smov 0   ;;  %s1068_s10 = smov 0  }
   0x4   :  { %s1070_s11 = smov 0   ;;  %s1072_s12 = smov 0  }
   0x5 LB: > { %s1087_s13 = sadd.s32 4294967295, %s1009_s12   ;;  %s802_s14 = sadd.s32 4294967294, %s1009_s12   ;;  %s1009_s12 = sphi %s1072_s12, %s1296_s12   ;;  %s1005_s11 = sphi %s1070_s11, %s1295_s11   ;;  %s1001_s10 = sphi %s1068_s10, %s1294_s10   ;;  %s997_s30 = sphi %s1066_s30, %s1293_s30  }
   0x6   : > { %s1091_s15 = sadd.s32 1, %s1009_s12   ;;  %s32_s16 = sadd.s32 1, %s1005_s11 }
   0x7   : > { %s29_s17 = ssub.s32 %s1009_s12, %s1091_s15  ;;  %p39_p0 = scmp.ne.s32.totalorder %s1005_s11, %s1001_s10 }
   0x8   : > { %p30_p1 = scmp.eq.s32.totalorder %s29_s17, 0  ;;  %p40_p2 = scmp.eq.s32.totalorder %s1009_s12, 0 }
   0x9   : > { %p45_p3 = scmp.ne.s32.totalorder %s1001_s10, %s997_s30  ;;  %p46_p4 = scmp.eq.s32.totalorder %s1087_s13, 0 }
   0xa   : > { %s1103_s18 = scalar_select %p30_p1, %s1005_s11, %s32_s16  }
   0xb   : > { %p1105_p5 = por %p40_p2, %p39_p0  ;;  %p1109_p6 = por %p46_p4, %p45_p3 }
   0xc   : > { %p237_p7 = scmp.eq.s32.totalorder %s1087_s13, 1  ;;  %p243_p8 = scmp.eq.s32.totalorder %s802_s14, 1 }
   0xd   : > { %p871_p10 = scmp.lt.s32.totalorder %s1009_s12, 2  ;;  %s287_s23 = sand.u32 1, %s1005_s11  }
   0xe   : > { %p1116_p11 = por %p237_p7, %p39_p0  ;;  %p1120_p12 = por %p243_p8, %p45_p3 }
   0xf   : > { %s825_s24 = sshll.u32 %s1009_s12, 7  ;;  %s805_s25 = sshll.u32 %s287_s23, 3 }
  0x10   : > { %s1285_s21 = scalar_select %p1116_p11, 1, 0 }
  0x11   : > { %s1286_s22 = scalar_select %p1120_p12, 1, 0 }
  0x12   : > { %s1129_s28 = scalar_lea.hbm %s1272_s0, %s825_s24  ;;  %s291_s29 = scalar_lea.vmem [#allocation2], %s805_s25 }
  0x13   : > { %s299_s14 = sshll.u32 %s291_s29, 4  ;;  %p1133_p13 = pnand %p871_p10, %p1105_p5  ;;  %s1137_s14 = int_to_ptr.vmem [resolvable:$true] %s299_s14 }
  0x14   : > { %s288_s17 = scalar_lea.sflag [#allocation3], %s287_s23  ;;  %s913_s24 = scalar_lea.hbm %s1129_s28, 128 }
  0x15   : > { %p914_p2 = scmp.ne.s32.totalorder %s1129_s28, %s913_s24  ;;  %p915_p3 = pneg %p1133_p13 }
  0x16   : > { %s918_s26 = scalar_lea.hbm %s1272_s0, 256  ;;  %p919_p5 = scmp.lt.u32.totalorder %s1129_s28, %s1272_s0 }
  0x17   : > { %p916_p4 = pnand %p915_p3, %p914_p2  ;;  %p920_p8 = scmp.lt.u32.totalorder %s918_s26, %s913_s24 }
  0x18   : > { %p922_p9 = scmp.lt.u32.totalorder %s913_s24, %s1129_s28 }
  0x19   : > { %p917_p7 = pneg %p916_p4  ;;  %p921_p10 = por %p920_p8, %p919_p5 }
  0x1b   : > { %p923_p0 = por %p922_p9, %p921_p10 }
  0x1d   : > { %p924_p1 = pnand %p923_p0, %p917_p7 }
  0x1f   : > { %927 = shalt.err (!%p924_p1)
}
  0x20   : > { %s928_s23 = scalar_lea.vmem %s1137_s14, 128  ;;  %s1011_s19 = smov [#allocation2]  }
  0x21   : > { %p929_p2 = scmp.ne.s32.totalorder %s1137_s14, %s928_s23  ;;  %s933_s25 = sshll.u32 %s1011_s19, 4  ;;  %s934_s25 = int_to_ptr.vmem [resolvable:$false] %s933_s25 }
  0x22   : > { %s935_s27 = scalar_lea.vmem %s934_s25, 256  ;;  %p936_p11 = scmp.lt.s32.totalorder %s1137_s14, %s934_s25 }
  0x23   : > { %p931_p4 = pnand %p929_p2, %p915_p3  ;;  %p937_p5 = scmp.lt.s32.totalorder %s935_s27, %s928_s23 }
  0x25   : > { %p932_p12 = pneg %p931_p4  ;;  %p938_p8 = por %p937_p5, %p936_p11 }
  0x27   : > { %p939_p9 = pnand %p938_p8, %p932_p12 }
  0x29   : > { %942 = shalt.err (!%p939_p9)
}
  0x2a   : > { %866 = dma.hbm_to_vmem [thread:$0]  (!%p1133_p13), %s1129_s28, 128, %s1137_s14, %s288_s17  }
  0x2b   : > { %p1288_p0 = scmp.lt.s32.totalorder %s1009_s12, 3  ;;  %p1289_p1 = scmp.ge.s32.totalorder %s1009_s12, 1 }
  0x2d   : > { %p305_p3 = pnand %p1289_p1, %p1288_p0 }
  0x2e   : > { %s1171_s24 = sand.u32 (!%p305_p3), 1, %s1001_s10  }
  0x2f   : > { %308 = sbr.rel (%p305_p3) target bundleno = 806 (0x326), region = 56  ;;  %s809_s26 = sshll.u32 (!%p305_p3), %s1171_s24, 3 }
  0x30   : > { %s311_s29 = scalar_lea.sflag (!%p305_p3), [#allocation3], %s1171_s24  ;;  %s314_s16 = scalar_lea.vmem (!%p305_p3), [#allocation2], %s809_s26 }
  0x36   : > { %988 = dma.done.wait (%p1109_p6), %s311_s29, 128  }
  0x37   : > { %990 = vsyncadd (%p1109_p6), %s311_s29, 4294967168  ;;  %vm353_vm0 = vcmask 1043456   ;;  %v1181_v0 = vld [vmem:[%s314_s16] sm:$0xff]  ;;  %v1012_v8 = vmov 0.0   ;;  %vm1013_vm1 = vmmov 0   ;;  %v368_v10 = vlaneseq  ;;  %s826_s25 = sshll.u32 %s1087_s13, 7 }
  0x38   : > { %v351_v1 = vcombine.high %v1181_v0, %v1181_v0  ;;  %v354_v2 = vsel %vm353_vm0, %v1181_v0, 0.0  ;;  %v360_v4 = vsel %vm353_vm0, %v1181_v0, -inf  ;;  %835 = vmatprep.subr.mxu0 %v1012_v8  ;;  %v365_v9 = vld [vmem:[%s1273_s1] sm:$0xf]  ;;  %840 = vmatprep.subr.mxu1 %v1012_v8  ;;  %vm374_vm2 = vcmask 31744   ;;  %s348_s27 = scalar_lea.vmem [#allocation5], %s809_s26  ;;  %s1228_s28 = scalar_lea.hbm %s1281_s9, %s826_s25 }
  0x39   : > { %836 = vmatpush3.msk.msra.mxu0 %vm353_vm0, %v365_v9  ;;  %837 = vmatprep.mubr.msk.f32.mxu0 %vm1013_vm1, %v1012_v8  ;;  %v369_v11 = vand.u32 127, %v368_v10  ;;  %v371_v12 = vshrl.u32 %v368_v10, 7  ;;  %v531_v17 = vld [vmem:[%s1277_s5] sm:$0xf]  ;;  %vm457_vm3 = vcmask 1041408   ;;  %vm453_vm4 = vcmask 15360  }
  0x3a   : > { %v355_v3 = vsel %vm353_vm0, %v351_v1, 0.0  ;;  %v361_v5 = vsel %vm353_vm0, %v351_v1, -inf  ;;  %845 = vmatprep.subr.mxu0 %v1012_v8  ;;  %842 = vmatprep.mubr.msk.f32.mxu1 %vm1013_vm1, %v1012_v8  ;;  %v451_v20 = vld [vmem:[%s1275_s3] sm:$0x3]  ;;  %v1014_v44 = vmov 839922192  }
  0x3b   : > { %v356_v6 = vadd.f32 %v355_v3, %v354_v2  ;;  %v362_v7 = vmax.f32 %v360_v4, %v361_v5  ;;  %v372_v13 = vsub.s32 %v369_v11, %v371_v12  ;;  %841 = vmatpush3.msk.msra.mxu1 %vm457_vm3, %v451_v20  ;;  %v366_v21 = vld [vmem:[%s1274_s2] sm:$0x1]  ;;  %v701_v41 = vsub.s32 0, %v371_v12  ;;  %s732_s29 = sshll.u32 %s348_s27, 4  ;;  %s718_s14 = scalar_lea.sflag [#allocation4], %s1171_s24  ;;  %s1230_s29 = int_to_ptr.vmem [resolvable:$true] %s732_s29 }
  0x3c   : > { %850 = vmatprep.subr.mxu1 %v1012_v8  ;;  %v532_v25 = vld [vmem:[%s1278_s6] sm:$0x1]  ;;  %v708_v45 = vunpack.c.l.s4 %v1014_v44  ;;  %s943_s17 = scalar_lea.vmem %s1230_s29, 128  ;;  %p1290_p11 = scmp.ne.s32.totalorder %s1285_s21, 0 }
  0x3d   : > { %357 = vadd.xlane.f32.xlu0 %v356_v6  ;;  %v614_v27 = vld [vmem:[%s1279_s7] sm:$0x3]  ;;  %p944_p6 = scmp.ne.s32.totalorder %s1230_s29, %s943_s17  ;;  %s1015_s13 = smov [#allocation5]  }
  0x3e   : > { %v452_v32 = vld [vmem:[%s1276_s4] sm:$0x1]  ;;  %v709_v46 = vunpack.c.0.s8 %v708_v45  ;;  %s947_s26 = sshll.u32 %s1015_s13, 4  ;;  %s948_s26 = int_to_ptr.vmem [resolvable:$false] %s947_s26 }
  0x3f   : > { %v615_v33 = vld [vmem:[%s1280_s8] sm:$0x1]  ;;  %p945_p12 = pnand %p944_p6, %p1290_p11  ;;  %s949_s23 = scalar_lea.vmem %s948_s26, 256 }
  0x40   : > { %v855_v34 = vadd.f32 %v615_v33, %v452_v32  ;;  %v712_v47 = vsub.s32 %v709_v46, %v371_v12  ;;  %p950_p7 = scmp.lt.s32.totalorder %s1230_s29, %s948_s26  ;;  %p951_p10 = scmp.lt.s32.totalorder %s949_s23, %s943_s17 }
  0x41   : > { %363 = vmax.xlane.f32.xlu0 %v362_v7  ;;  %p946_p13 = pneg %p945_p12 }
  0x42   : > { %p952_p2 = por %p951_p10, %p950_p7 }
  0x44   : > { %p953_p4 = pnand %p952_p2, %p946_p13 }
  0xca   : > { %v358_v14 = vpop.xlane.xlu0 %357 }
  0xcb   : > { %v359_v15 = vmul.f32 0.00390625, %v358_v14 }
  0xcd   : > { %v373_v16 = vrot.slane %v359_v15, %v372_v13 }
  0xce   : > { %v364_v18 = vpop.xlane.xlu0 %363 }
  0xcf   : > { %838 = vmatmul.mubr.msk.f32.vlgmr.msra.gmra.mrb[0].mxu0 %vm374_vm2, %v373_v16  ;;  %v537_v19 = vrot.slane %v364_v18, %v372_v13 }
  0xd0   : > { %846 = vmatpush3.msk.msra.mxu0 %vm353_vm0, %v531_v17  ;;  %847 = vmatprep.mubr.msk.f32.mxu0 %vm1013_vm1, %v1012_v8 }
  0xd3   : > { %848 = vmatmul.mubr.msk.f32.vlgmr.msra.gmra.mrb[2].mxu0 %vm374_vm2, %v537_v19 }
 0x1a2   : > { %v446_v22 = vpop.f32.mrb[0].mxu0 }
 0x1a3   : > { %v447_v23 = vadd.f32 %v446_v22, %v366_v21  ;;  %v839_v24 = vpop.f32.mrb[1].mxu0 }
 0x1a5   : > { %v450_v26 = vmax.f32 %v447_v23, 0.0 }
 0x1a6   : > { %v609_v28 = vpop.f32.mrb[2].mxu0 }
 0x1a7   : > { %843 = vmatmul.mubr.msk.f32.vlgmr.msra.gmra.mrb[0].mxu1 %vm453_vm4, %v450_v26  ;;  %v610_v29 = vadd.f32 %v609_v28, %v532_v25  ;;  %v849_v30 = vpop.f32.mrb[3].mxu0 }
 0x1a8   : > { %851 = vmatpush3.msk.msra.mxu1 %vm457_vm3, %v614_v27  ;;  %852 = vmatprep.mubr.msk.f32.mxu1 %vm1013_vm1, %v1012_v8 }
 0x1a9   : > { %v613_v31 = vmax.f32 %v610_v29, 0.0 }
 0x1af   : > { %853 = vmatmul.mubr.msk.f32.vlgmr.msra.gmra.mrb[0].mxu1 %vm453_vm4, %v613_v31 }
 0x282   : > { %v688_v35 = vpop.f32.mrb[0].mxu1 }
 0x283   : > { %v856_v36 = vadd.f32 %v855_v34, %v688_v35  ;;  %v854_v37 = vpop.f32.mrb[1].mxu1 }
 0x285   : > { %v819_v38 = vmul.f32 -1.442695, %v856_v36 }
 0x287   : > { %909 = vpow2.f32 %v819_v38 }
 0x291   : > { %v910_v39 = vpop.eup %909 }
 0x292   : > { %v696_v40 = vadd.f32 1.0, %v910_v39 }
 0x294   : > { %911 = vrcp.f32 %v696_v40 }
 0x29e   : > { %v912_v42 = vpop.eup %911 }
 0x29f   : > { %v702_v43 = vrot.slane %v912_v42, %v701_v41 }
 0x2a1   : > { %704 = vbcast.lane.b32.xlu1 %v702_v43, 256 }
 0x313   : > { %v705_v48 = vpop.permute.xlu1 %704 }
 0x314   : > { %v713_v49 = vrot.slane %v705_v48, %v712_v47 }
 0x316   : > { %v715_v50 = vmul.f32 %v713_v49, %v1181_v0 }
 0x318   : > { %716 = vst [vmem:[%s348_s27] sm:$0xff] %v715_v50 }
 0x319   : > { %956 = shalt.err (!%p953_p4)
}
 0x31a   : > { %s957_s24 = scalar_lea.hbm %s1228_s28, 128  ;;  %s961_s27 = scalar_lea.hbm %s1281_s9, 256 }
 0x31b   : > { %p958_p5 = scmp.ne.s32.totalorder %s1228_s28, %s957_s24  ;;  %p962_p0 = scmp.lt.u32.totalorder %s1228_s28, %s1281_s9 }
 0x31c   : > { %p963_p1 = scmp.lt.u32.totalorder %s961_s27, %s957_s24  ;;  %p965_p6 = scmp.lt.u32.totalorder %s957_s24, %s1228_s28 }
 0x31d   : > { %p959_p8 = pnand %p958_p5, %p1290_p11 }
 0x31e   : > { %p964_p3 = por %p963_p1, %p962_p0 }
 0x31f   : > { %p960_p9 = pneg %p959_p8 }
 0x320   : > { %p966_p12 = por %p965_p6, %p964_p3 }
 0x322   : > { %p967_p13 = pnand %p966_p12, %p960_p9 }
 0x324   : > { %970 = shalt.err (!%p967_p13)
}
 0x325   : > { %861 = dma.vmem_to_hbm [thread:$0]  (%p1290_p11), %s1230_s29, 128, %s1228_s28, %s718_s14  }
 0x326 PF: > { %s744_s17 = sand.u32 1, %s997_s30   ;;  %p1291_p7 = scmp.ne.s32.totalorder %s1286_s22, 0 }
 0x327   : > { %p1292_p10 = scmp.ge.s32.totalorder %s1009_s12, 2  ;;  %s745_s13 = scalar_lea.sflag [#allocation4], %s744_s17 }
 0x329   : > { %p868_p2 = pnand %p1292_p10, %p1291_p7 }
 0x32b   : > { %992 = dma.done.wait (!%p868_p2), %s745_s13, 128  }
 0x32c   : > { %994 = vsyncadd (!%p868_p2), %s745_s13, 4294967168  ;;  %p22_p4 = scmp.ge.s32.totalorder %s1091_s15, 4   ;;  %s1293_s30 = smov %s1001_s10 }
 0x32d   : > { %s1294_s10 = smov %s1005_s11  ;;  %s1295_s11 = smov %s1103_s18 }
 0x32e   : > { %s1296_s12 = smov %s1091_s15  ;;  %24 = sbr.rel (!%p22_p4) target bundleno = 5 (0x5), region = 101 }
 0x335   :  { %750 = vsyncpa [#allocation3], 1 }
 0x336   :  { %752 = vsyncpa [#allocation3 + $0x1], 1 }
 0x337   :  { %753 = vsyncpa [#allocation4], 1 }
 0x338   :  { %755 = vsyncpa [#allocation4 + $0x1], 1 }

</bundles_post_ra>
